<compile_context>
chip_gen: v7x
topology: tpu7x:2x2x1
jax: 0.10.0
libtpu: 0.0.40
codegen_flags: <defaults>
</compile_context>

<pallas_src>
import functools

import jax
import jax.numpy as jnp
from jax.experimental import pallas as pl
from jax.experimental.pallas import tpu as pltpu

LANES = 128
MAX_TILE_ROWS = 2048   # 2048x128 f32 = 1 MiB / input / buffer -> ~4 MiB VMEM double-buffered
NCORES = 2             # leading "parallel" grid axis (2 TCs on v7x; harmless on 1-TC chips)
# NOTE: on v7x, if xprof shows one TensorCore idle, switch axis 0 to pltpu.CORE_PARALLEL.

# logit(1 - 1e-4): clamp(sigmoid(x), 1e-4, 1-1e-4) == sigmoid(clamp(x, -XCLIP, XCLIP))
_XCLIP = 9.2102403669758494


def _focal_terms(x, gt):
    """Elementwise focal-loss terms. x = raw logits (f32), gt = target heatmap (f32).

    Returns (term, pos_ind): term = per-element pos_loss + neg_loss contribution,
    pos_ind = [gt == 1] as f32. Only two EUP transcendentals per element:
      pred        = 0.5 * (1 + tanh(xc/2))   (= sigmoid(xc) = clamp(sigmoid(x), 1e-4, 1-1e-4))
      log(pred)   = log(pred)
      log(1-pred) = log(pred) - xc
    """
    xc = jnp.clip(x, -_XCLIP, _XCLIP)
    pred = 0.5 + 0.5 * jnp.tanh(0.5 * xc)
    log_pred = jnp.log(pred)
    log_npred = log_pred - xc

    omp = 1.0 - pred
    pos_term = log_pred * (omp * omp)

    omg = 1.0 - gt
    neg_w = omg * omg
    neg_w = neg_w * neg_w                      # (1 - gt)^4
    neg_term = log_npred * (pred * pred) * neg_w

    is_pos = gt == 1.0
    term = jnp.where(is_pos, pos_term, jnp.where(gt < 1.0, neg_term, 0.0))
    pos_ind = is_pos.astype(jnp.float32)
    return term, pos_ind


def _hm_focal_kernel(x_ref, gt_ref, loss_ref, npos_ref, *,
                     blocks_per_core, num_blocks, skip_duplicates):
    """Accumulate per-core focal-loss partial sums into (8, 128) VMEM output blocks."""
    t = pl.program_id(1)                       # "arbitrary" (reduction) axis

    @pl.when(t == 0)
    def _init():
        loss_ref[...] = jnp.zeros_like(loss_ref)
        npos_ref[...] = jnp.zeros_like(npos_ref)

    def _accumulate():
        x = x_ref[...].astype(jnp.float32)
        gt = gt_ref[...].astype(jnp.float32)
        term, pos_ind = _focal_terms(x, gt)
        rows = x_ref.shape[0]
        # (tile_rows, 128) -> (8, 128): tile-aligned reshape + leading-axis sum
        # (pure VALU vreg adds, no cross-lane work, no big accumulator RMW).
        loss_ref[...] += jnp.sum(term.reshape(rows // 8, 8, LANES), axis=0)
        npos_ref[...] += jnp.sum(pos_ind.reshape(rows // 8, 8, LANES), axis=0)

    if skip_duplicates:
        # When num_blocks % ncores != 0, the last core sees clamped duplicate blocks:
        # skip their compute entirely (only the DMA of an already-fetched block remains).
        c = pl.program_id(0)

        @pl.when(c * blocks_per_core + t < num_blocks)
        def _():
            _accumulate()
    else:
        _accumulate()


def _sublane_multiple(dtype):
    # Minimum sublane tile: 8 for 4-byte, 16 for 2-byte, 32 for 1-byte dtypes.
    return 8 * max(1, 4 // jnp.dtype(dtype).itemsize)


@jax.jit
def hm_loss(logits, targets):
    """HMLoss forward. logits/targets: (N, C, H, W); logits are pre-sigmoid heatmaps."""
    assert logits.shape == targets.shape
    n = logits.size
    x_flat = logits.reshape(-1)
    gt_flat = targets.reshape(-1)

    rows_total = n // LANES
    min_sub = max(_sublane_multiple(logits.dtype), _sublane_multiple(targets.dtype))
    tile_rows = min(MAX_TILE_ROWS, (rows_total // min_sub) * min_sub)
    num_blocks = rows_total // tile_rows if tile_rows > 0 else 0
    n_main = num_blocks * tile_rows * LANES

    loss_total = jnp.float32(0.0)
    npos_total = jnp.float32(0.0)

    if num_blocks > 0:
        # Lane-dense 2-D view in native dtype; no padding / concatenation. The slice
        # is a no-op when n % 128 == 0 and the reshape is layout-free when W % 128 == 0.
        x2 = x_flat[: rows_total * LANES].reshape(rows_total, LANES)
        gt2 = gt_flat[: rows_total * LANES].reshape(rows_total, LANES)

        ncores = min(NCORES, num_blocks)
        blocks_per_core = -(-num_blocks // ncores)
        skip_duplicates = ncores * blocks_per_core > num_blocks

        def in_map(c, t):
            # Clamp so duplicated (skipped) steps never index past the last real block.
            return (jnp.minimum(c * blocks_per_core + t, num_blocks - 1), 0)

        kernel = functools.partial(
            _hm_focal_kernel,
            blocks_per_core=blocks_per_core,
            num_blocks=num_blocks,
            skip_duplicates=skip_duplicates,
        )

        loss_part, npos_part = pl.pallas_call(
            kernel,
            out_shape=(
                jax.ShapeDtypeStruct((ncores * 8, LANES), jnp.float32),
                jax.ShapeDtypeStruct((ncores * 8, LANES), jnp.float32),
            ),
            grid_spec=pltpu.PrefetchScalarGridSpec(
                num_scalar_prefetch=0,
                grid=(ncores, blocks_per_core),
                in_specs=[
                    pl.BlockSpec((tile_rows, LANES), in_map),
                    pl.BlockSpec((tile_rows, LANES), in_map),
                ],
                out_specs=[
                    pl.BlockSpec((8, LANES), lambda c, t: (c, 0)),
                    pl.BlockSpec((8, LANES), lambda c, t: (c, 0)),
                ],
            ),
            compiler_params=pltpu.CompilerParams(
                dimension_semantics=("parallel", "arbitrary"),
                vmem_limit_bytes=32 * 1024 * 1024,
            ),
        )(x2, gt2)

        loss_total = loss_total + jnp.sum(loss_part)
        npos_total = npos_total + jnp.sum(npos_part)

    if n_main < n:
        # Remainder: rows left over by the tile split plus any <128-element lane tail.
        # Strictly less than one tile of data; plain jnp, no padding of the main slab.
        term_r, pos_r = _focal_terms(x_flat[n_main:].astype(jnp.float32),
                                     gt_flat[n_main:].astype(jnp.float32))
        loss_total = loss_total + jnp.sum(term_r)
        npos_total = npos_total + jnp.sum(pos_r)

    # num_pos == 0 implies pos_loss == 0, so -(pos+neg)/max(num_pos,1) == -neg_loss.
    return -loss_total / jnp.maximum(npos_total, 1.0)


def _reference_hm_loss(logits, targets):
    """Pure-JAX reference mirroring the PyTorch code, for sanity checking."""
    pred = jnp.clip(jax.nn.sigmoid(logits.astype(jnp.float32)), 1e-4, 1.0 - 1e-4)
    gt = targets.astype(jnp.float32)
    pos_inds = (gt == 1.0).astype(jnp.float32)
    neg_inds = (gt < 1.0).astype(jnp.float32)
    neg_weights = (1.0 - gt) ** 4
    pos_loss = jnp.sum(jnp.log(pred) * (1.0 - pred) ** 2 * pos_inds)
    neg_loss = jnp.sum(jnp.log(1.0 - pred) * pred ** 2 * neg_weights * neg_inds)
    num_pos = jnp.sum(pos_inds)
    return jnp.where(num_pos == 0.0, -neg_loss, -(pos_loss + neg_loss) / num_pos)


if __name__ == "__main__":
    key = jax.random.PRNGKey(0)
    k1, k2, k3 = jax.random.split(key, 3)

    B, C, H, W = 2, 4, 16, 16
    # Raw heatmap logits (pre-sigmoid), as HMLoss expects (it applies _sigmoid).
    logits = jax.random.normal(k1, (B, C, H, W), dtype=jnp.float32)
    # Ground-truth heatmap in [0, 1) with a sprinkle of exact 1.0 peaks.
    soft = jax.random.uniform(k2, (B, C, H, W), dtype=jnp.float32, maxval=0.99)
    peaks = jax.random.bernoulli(k3, p=0.02, shape=(B, C, H, W))
    targets = jnp.where(peaks, jnp.float32(1.0), soft)

    loss = hm_loss(logits, targets)
    jax.block_until_ready(loss)

    ref = _reference_hm_loss(logits, targets)
    assert jnp.allclose(loss, ref, rtol=1e-4, atol=1e-4), (loss, ref)

    print("KERNEL_OK")
</pallas_src>

<mosaic_0001>
module attributes {stable_mosaic.version = 11 : i64} {
  func.func @_hm_focal_kernel(%arg0: i32, %arg1: i32, %arg2: memref<16x128xf32, #tpu.memory_space<vmem>>, %arg3: memref<16x128xf32, #tpu.memory_space<vmem>>, %arg4: memref<8x128xf32, #tpu.memory_space<vmem>>, %arg5: memref<8x128xf32, #tpu.memory_space<vmem>>) attributes {dimension_semantics = [#tpu.dimension_semantics<parallel>, #tpu.dimension_semantics<arbitrary>], iteration_bounds = array<i64: 1, 1>, scalar_prefetch = 0 : i64, scratch_operands = 0 : i64, tpu.core_type = #tpu.core_type<tc>, window_params = [{transform_indices = @transform_0, window_bounds = array<i64: 16, 128>}, {transform_indices = @transform_1, window_bounds = array<i64: 16, 128>}, {transform_indices = @transform_2, window_bounds = array<i64: 8, 128>}, {transform_indices = @transform_3, window_bounds = array<i64: 8, 128>}]} {
    %c0_i32 = arith.constant 0 : i32
    %0 = arith.cmpi eq, %arg1, %c0_i32 : i32
    %1 = arith.extui %0 : i1 to i32
    %c0_i32_0 = arith.constant 0 : i32
    %2 = arith.cmpi ne, %1, %c0_i32_0 : i32
    scf.if %2 {
      %cst_23 = arith.constant 0.000000e+00 : f32
      %48 = vector.broadcast %cst_23 : f32 to vector<8x128xf32>
      %c0_24 = arith.constant 0 : index
      %c0_25 = arith.constant 0 : index
      %49 = vector.load %arg4[%c0_24, %c0_25] : memref<8x128xf32, #tpu.memory_space<vmem>>, vector<8x128xf32>
      tpu.vector_store %arg4[%c0_24, %c0_25], %48 {strides = array<i32>} : memref<8x128xf32, #tpu.memory_space<vmem>>, vector<8x128xf32>,
      %cst_26 = arith.constant 0.000000e+00 : f32
      %50 = vector.broadcast %cst_26 : f32 to vector<8x128xf32>
      %c0_27 = arith.constant 0 : index
      %c0_28 = arith.constant 0 : index
      %51 = vector.load %arg5[%c0_27, %c0_28] : memref<8x128xf32, #tpu.memory_space<vmem>>, vector<8x128xf32>
      tpu.vector_store %arg5[%c0_27, %c0_28], %50 {strides = array<i32>} : memref<8x128xf32, #tpu.memory_space<vmem>>, vector<8x128xf32>,
    } else {
    }
    %c0 = arith.constant 0 : index
    %c0_1 = arith.constant 0 : index
    %3 = vector.load %arg2[%c0, %c0_1] : memref<16x128xf32, #tpu.memory_space<vmem>>, vector<16x128xf32>
    %c0_2 = arith.constant 0 : index
    %c0_3 = arith.constant 0 : index
    %4 = vector.load %arg3[%c0_2, %c0_3] : memref<16x128xf32, #tpu.memory_space<vmem>>, vector<16x128xf32>
    %cst = arith.constant -9.210240e+00 : f32
    %cst_4 = arith.constant 9.210240e+00 : f32
    %5 = vector.broadcast %cst : f32 to vector<16x128xf32>
    %6 = arith.maximumf %5, %3 : vector<16x128xf32>
    %7 = vector.broadcast %cst_4 : f32 to vector<16x128xf32>
    %8 = arith.minimumf %7, %6 : vector<16x128xf32>
    %cst_5 = arith.constant 5.000000e-01 : f32
    %9 = vector.broadcast %cst_5 : f32 to vector<16x128xf32>
    %10 = arith.mulf %9, %8 : vector<16x128xf32>
    %11 = math.tanh %10 : vector<16x128xf32>
    %cst_6 = arith.constant 5.000000e-01 : f32
    %12 = vector.broadcast %cst_6 : f32 to vector<16x128xf32>
    %13 = arith.mulf %12, %11 : vector<16x128xf32>
    %cst_7 = arith.constant 5.000000e-01 : f32
    %14 = vector.broadcast %cst_7 : f32 to vector<16x128xf32>
    %15 = arith.addf %14, %13 : vector<16x128xf32>
    %16 = math.log %15 : vector<16x128xf32>
    %17 = arith.subf %16, %8 : vector<16x128xf32>
    %cst_8 = arith.constant 1.000000e+00 : f32
    %18 = vector.broadcast %cst_8 : f32 to vector<16x128xf32>
    %19 = arith.subf %18, %15 : vector<16x128xf32>
    %20 = arith.mulf %19, %19 : vector<16x128xf32>
    %21 = arith.mulf %16, %20 : vector<16x128xf32>
    %cst_9 = arith.constant 1.000000e+00 : f32
    %22 = vector.broadcast %cst_9 : f32 to vector<16x128xf32>
    %23 = arith.subf %22, %4 : vector<16x128xf32>
    %24 = arith.mulf %23, %23 : vector<16x128xf32>
    %25 = arith.mulf %24, %24 : vector<16x128xf32>
    %26 = arith.mulf %15, %15 : vector<16x128xf32>
    %27 = arith.mulf %17, %26 : vector<16x128xf32>
    %28 = arith.mulf %27, %25 : vector<16x128xf32>
    %cst_10 = arith.constant 1.000000e+00 : f32
    %29 = vector.broadcast %cst_10 : f32 to vector<16x128xf32>
    %30 = arith.cmpf oeq, %4, %29 : vector<16x128xf32>
    %cst_11 = arith.constant 1.000000e+00 : f32
    %31 = vector.broadcast %cst_11 : f32 to vector<16x128xf32>
    %32 = arith.cmpf olt, %4, %31 : vector<16x128xf32>
    %cst_12 = arith.constant 0.000000e+00 : f32
    %33 = vector.broadcast %cst_12 : f32 to vector<16x128xf32>
    %34 = arith.select %32, %28, %33 : vector<16x128xi1>, vector<16x128xf32>
    %35 = arith.select %30, %21, %34 : vector<16x128xi1>, vector<16x128xf32>
    %36 = arith.extui %30 : vector<16x128xi1> to vector<16x128xi32>
    %37 = arith.sitofp %36 : vector<16x128xi32> to vector<16x128xf32>
    %c0_13 = arith.constant 0 : index
    %c0_14 = arith.constant 0 : index
    %38 = vector.load %arg4[%c0_13, %c0_14] : memref<8x128xf32, #tpu.memory_space<vmem>>, vector<8x128xf32>
    %39 = vector.shape_cast %35 : vector<16x128xf32> to vector<2x8x128xf32>
    %cst_15 = arith.constant dense<0.000000e+00> : vector<8x128xf32>
    %40 = vector.multi_reduction <add>, %39, %cst_15 [0] : vector<2x8x128xf32> to vector<8x128xf32>
    %41 = arith.addf %38, %40 : vector<8x128xf32>
    %c0_16 = arith.constant 0 : index
    %c0_17 = arith.constant 0 : index
    %42 = vector.load %arg4[%c0_16, %c0_17] : memref<8x128xf32, #tpu.memory_space<vmem>>, vector<8x128xf32>
    tpu.vector_store %arg4[%c0_16, %c0_17], %41 {strides = array<i32>} : memref<8x128xf32, #tpu.memory_space<vmem>>, vector<8x128xf32>,
    %c0_18 = arith.constant 0 : index
    %c0_19 = arith.constant 0 : index
    %43 = vector.load %arg5[%c0_18, %c0_19] : memref<8x128xf32, #tpu.memory_space<vmem>>, vector<8x128xf32>
    %44 = vector.shape_cast %37 : vector<16x128xf32> to vector<2x8x128xf32>
    %cst_20 = arith.constant dense<0.000000e+00> : vector<8x128xf32>
    %45 = vector.multi_reduction <add>, %44, %cst_20 [0] : vector<2x8x128xf32> to vector<8x128xf32>
    %46 = arith.addf %43, %45 : vector<8x128xf32>
    %c0_21 = arith.constant 0 : index
    %c0_22 = arith.constant 0 : index
    %47 = vector.load %arg5[%c0_21, %c0_22] : memref<8x128xf32, #tpu.memory_space<vmem>>, vector<8x128xf32>
    tpu.vector_store %arg5[%c0_21, %c0_22], %46 {strides = array<i32>} : memref<8x128xf32, #tpu.memory_space<vmem>>, vector<8x128xf32>,
    return
  }
  func.func @transform_0(%arg0: i32, %arg1: i32) -> (i32, i32) {
    %c1_i32 = arith.constant 1 : i32
    %0 = arith.muli %arg0, %c1_i32 : i32
    %1 = arith.addi %0, %arg1 : i32
    %c0_i32 = arith.constant 0 : i32
    %2 = arith.minsi %1, %c0_i32 : i32
    %c0_i32_0 = arith.constant 0 : i32
    %c0_i32_1 = arith.constant 0 : i32
    return %2, %c0_i32_0 : i32, i32
  }
  func.func @transform_1(%arg0: i32, %arg1: i32) -> (i32, i32) {
    %c1_i32 = arith.constant 1 : i32
    %0 = arith.muli %arg0, %c1_i32 : i32
    %1 = arith.addi %0, %arg1 : i32
    %c0_i32 = arith.constant 0 : i32
    %2 = arith.minsi %1, %c0_i32 : i32
    %c0_i32_0 = arith.constant 0 : i32
    %c0_i32_1 = arith.constant 0 : i32
    return %2, %c0_i32_0 : i32, i32
  }
  func.func @transform_2(%arg0: i32, %arg1: i32) -> (i32, i32) {
    %c0_i32 = arith.constant 0 : i32
    %c0_i32_0 = arith.constant 0 : i32
    return %arg0, %c0_i32 : i32, i32
  }
  func.func @transform_3(%arg0: i32, %arg1: i32) -> (i32, i32) {
    %c0_i32 = arith.constant 0 : i32
    %c0_i32_0 = arith.constant 0 : i32
    return %arg0, %c0_i32 : i32, i32
  }
}

</mosaic_0001>

<bundles_post_ra>
// kernel: hm_loss.1
= control target key start
LH: loop header
LB: loop body
LE: loop exit
PB: predicated region body
PF: predicated region fallthrough
CT: control target
= control target key end

     0   :  { %v176_v8 = vmov 0.0   ;;  %s219_s0 = inlined_call_operand.vmem [shape: f32[16,128], index: 0, kind: input, shape index: {}]   ;;  %s220_s1 = inlined_call_operand.vmem [shape: f32[16,128], index: 1, kind: input, shape index: {}]   ;;  %s221_s3 = inlined_call_operand.vmem [shape: f32[8,128], index: 3, kind: output, shape index: {1}]   ;;  %s222_s2 = inlined_call_operand.vmem [shape: f32[8,128], index: 2, kind: output, shape index: {0}]  }
   0x1   :  { %v83_v0 = vld [vmem:[%s219_s0] sm:$0xff]  ;;  %v84_v1 = vld [vmem:[%s219_s0 + $0x8] sm:$0xff] }
   0x2   :  { %v85_v2 = vld [vmem:[%s220_s1] sm:$0xff]  ;;  %v86_v3 = vld [vmem:[%s220_s1 + $0x8] sm:$0xff]  ;;  %v163_v4 = vclamps-f32 %v83_v0, 9.21024  ;;  %v164_v5 = vclamps-f32 %v84_v1, 9.21024 }
   0x3   :  { %vm123_vm0 = vcmp.eq.f32.partialorder %v85_v2, 1.0  ;;  %vm124_vm1 = vcmp.eq.f32.partialorder %v86_v3, 1.0  ;;  %v111_v18 = vsub.f32 1.0, %v85_v2  ;;  %v112_v19 = vsub.f32 1.0, %v86_v3 }
   0x4   :  { %v91_v6 = vmul.f32 0.5, %v163_v4  ;;  %v92_v7 = vmul.f32 0.5, %v164_v5  ;;  %v165_v9 = vsel %vm123_vm0, 1.0, %v176_v8  ;;  %v166_v10 = vsel %vm124_vm1, 1.0, %v176_v8 }
   0x5   :  { %v140_v11 = vadd.f32 %v166_v10, %v165_v9  ;;  %v113_v22 = vmul.f32 %v111_v18, %v111_v18  ;;  %v114_v24 = vmul.f32 %v112_v19, %v112_v19  ;;  %vm125_vm2 = vcmp.lt.f32.partialorder %v85_v2, 1.0 }
   0x6   :  { %168 = vtanh.f32 %v91_v6  ;;  %vm126_vm3 = vcmp.lt.f32.partialorder %v86_v3, 1.0 }
   0x7   :  { %170 = vtanh.f32 %v92_v7  ;;  %142 = vst [vmem:[%s221_s3] sm:$0xff] %v140_v11  ;;  %v115_v33 = vmul.f32 %v113_v22, %v113_v22  ;;  %v116_v35 = vmul.f32 %v114_v24, %v114_v24 }
  0x10   :  { %v169_v12 = vpop.eup %168 }
  0x11   :  { %v171_v13 = vpop.eup %170  ;;  %v95_v14 = vmul.f32 0.5, %v169_v12 }
  0x12   :  { %v96_v15 = vmul.f32 0.5, %v171_v13 }
  0x13   :  { %v97_v16 = vadd.f32 0.5, %v95_v14 }
  0x14   :  { %v98_v17 = vadd.f32 0.5, %v96_v15 }
  0x15   :  { %172 = vlog2.f32 %v97_v16  ;;  %v105_v20 = vsub.f32 1.0, %v97_v16  ;;  %v117_v27 = vmul.f32 %v97_v16, %v97_v16 }
  0x16   :  { %174 = vlog2.f32 %v98_v17  ;;  %v106_v21 = vsub.f32 1.0, %v98_v17  ;;  %v118_v30 = vmul.f32 %v98_v17, %v98_v17 }
  0x17   :  { %v107_v29 = vmul.f32 %v105_v20, %v105_v20 }
  0x18   :  { %v108_v32 = vmul.f32 %v106_v21, %v106_v21 }
  0x1f   :  { %v173_v23 = vpop.eup %172 }
  0x20   :  { %v175_v25 = vpop.eup %174  ;;  %v100_v26 = vmul.f32 0.6931472, %v173_v23 }
  0x21   :  { %v102_v28 = vmul.f32 0.6931472, %v175_v25 }
  0x22   :  { %v103_v31 = vsub.f32 %v100_v26, %v163_v4  ;;  %v109_v37 = vmul.f32 %v107_v29, %v100_v26 }
  0x23   :  { %v104_v34 = vsub.f32 %v102_v28, %v164_v5  ;;  %v110_v39 = vmul.f32 %v108_v32, %v102_v28 }
  0x24   :  { %v119_v36 = vmul.f32 %v117_v27, %v103_v31 }
  0x25   :  { %v120_v38 = vmul.f32 %v118_v30, %v104_v34 }
  0x26   :  { %v121_v40 = vmul.f32 %v119_v36, %v115_v33 }
  0x27   :  { %v122_v41 = vmul.f32 %v120_v38, %v116_v35 }
  0x28   :  { %v127_v42 = vsel %vm125_vm2, %v121_v40, 0.0 }
  0x29   :  { %v128_v43 = vsel %vm126_vm3, %v122_v41, 0.0  ;;  %v129_v44 = vsel %vm123_vm0, %v109_v37, %v127_v42 }
  0x2a   :  { %v130_v45 = vsel %vm124_vm1, %v110_v39, %v128_v43 }
  0x2b   :  { %v136_v46 = vadd.f32 %v130_v45, %v129_v44 }
  0x2d   :  { %138 = vst [vmem:[%s222_s2] sm:$0xff] %v136_v46 }

</bundles_post_ra>
